<compile_context>
chip_gen: v6e
topology: v6e:2x2x1
jax: 0.10.0
libtpu: 0.0.40
codegen_flags: <defaults>
</compile_context>

<pallas_src>
import numpy as np
import jax
import jax.numpy as jnp
from jax.experimental import pallas as pl
from jax.experimental.pallas import tpu as pltpu


def _make_kernel(N, C, B, H, W):
    CB = C * B
    HW = H * W
    L = N * HW                      # lane width (batch folded onto lanes)
    eps = 1e-5
    inv_cnt = 1.0 / float(L)        # BN count per channel = N*H*W elements
    # static 3x3 tap offsets (dh, dw), row-major in (kh, kw) -- must match the
    # host-side weight packing order (t = kh*3 + kw) and the mask row order.
    tap_list = [(dh, dw) for dh in (-1, 0, 1) for dw in (-1, 0, 1)]

    def kernel(x_ref, w0_ref, w1_ref, sel_ref, m_ref, o_ref):
        x = x_ref[...]                               # (C, L) f32
        m = m_ref[...]                               # (8, L) boundary masks

        def im2col(a):
            # a: (R, L) -> (9*R, L).  For tap (dh,dw), row block t holds
            # a[:, p + dh*W + dw] with out-of-image taps zeroed (== zero padding).
            # The per-lane masks also zero any wrap across image/batch boundaries,
            # so rolling the full N*HW lane axis never mixes batches.
            cols = []
            mi = 0
            for dh, dw in tap_list:
                off = dh * W + dw
                if off == 0:
                    cols.append(a)                   # center tap, mask is all-ones
                else:
                    shifted = pltpu.roll(a, (-off) % L, axis=1)
                    cols.append(shifted * m[mi:mi + 1, :])
                    mi += 1
            return jnp.concatenate(cols, axis=0)

        def batchnorm(y):
            # y: (CB, L); rows are channels, lanes are (batch, spatial).
            # Training-mode batch stats (biased var, affine=False), single fused
            # pass, applied as per-channel scale + shift.
            s1 = jnp.sum(y, axis=1, keepdims=True)           # (CB, 1)
            s2 = jnp.sum(y * y, axis=1, keepdims=True)
            mu = s1 * inv_cnt
            var = s2 * inv_cnt - mu * mu
            scale = jax.lax.rsqrt(var + eps)
            return y * scale + (-mu * scale)

        # ---- conv0 (C -> C*B, 3x3, pad 1): ONE matmul, K = 9*C ----------------
        xc = im2col(x)                                        # (9*C, L)
        y = jnp.dot(w0_ref[...], xc, preferred_element_type=jnp.float32)
        z = jnp.maximum(batchnorm(y), 0.0)                    # bn0 + relu

        # ---- conv1 (grouped, groups=B): ONE group-block-diag matmul, K = 9*CB -
        zc = im2col(z)                                        # (9*CB, L)
        u = jnp.dot(w1_ref[...], zc, preferred_element_type=jnp.float32)
        u = batchnorm(u)                                      # bn1

        # ---- mean over branches: tiny constant matmul (C, CB) @ (CB, L) -------
        agg = jnp.dot(sel_ref[...], u, preferred_element_type=jnp.float32)

        # ---- residual add + final relu, lane-dense store ----------------------
        o_ref[...] = jnp.maximum(x + agg, 0.0)

    return kernel


def pack_branch_block_params(w0, w1, input_shape, *, branches=2):
    """Pack PyTorch OIHW conv weights into the matmul form the kernel expects.

    Call ONCE per parameter set (e.g. per training step), outside the per-call
    forward path.  Conv biases are intentionally not packed: they are cancelled
    exactly by the affine=False training-mode BatchNorm that follows each conv.
    """
    N, C, H, W = input_shape
    B = branches
    CB = C * B
    HW = H * W
    L = N * HW
    f32 = jnp.float32
    assert w0.shape == (CB, C, 3, 3) and w1.shape == (CB, C, 3, 3)

    # conv0: w0big[co, (kh*3+kw)*C + ci] = w0[co, ci, kh, kw]
    w0big = jnp.transpose(w0.astype(f32), (0, 2, 3, 1)).reshape(CB, 9 * C)

    # conv1 (groups=B), block-diagonal over groups only:
    #   w1big[g*C+co, (kh*3+kw)*CB + g*C + ci] = w1[g*C+co, ci, kh, kw]
    w1g = w1.astype(f32).reshape(B, C, C, 3, 3)               # (g, co, ci, kh, kw)
    eyeB = jnp.eye(B, dtype=f32)
    w1big = jnp.einsum('gf,gcikl->gcklfi', eyeB, w1g).reshape(CB, 9 * CB)

    # branch mean: sel[c, g*C + cc] = [cc == c] / B
    sel = jnp.tile(jnp.eye(C, dtype=f32), (1, B)) / float(B)

    # zero-padding boundary masks for the 8 non-center taps, over the N*HW lanes.
    p = np.arange(L)
    s = p % HW
    hh = s // W
    ww = s % W
    rows = []
    for dh in (-1, 0, 1):
        for dw in (-1, 0, 1):
            if dh == 0 and dw == 0:
                continue
            valid = (hh + dh >= 0) & (hh + dh < H) & (ww + dw >= 0) & (ww + dw < W)
            rows.append(valid.astype(np.float32))
    masks = jnp.asarray(np.stack(rows, axis=0))               # (8, L)

    return w0big, w1big, sel, masks


def branch_block_forward(x_nchw, w0big, w1big, sel, masks):
    """BranchBlock forward from pre-packed params.  x_nchw: (N, C, H, W) f32.

    Best lane utilization when N*H*W is a multiple of 128."""
    N, C, H, W = x_nchw.shape
    CB = w0big.shape[0]
    B = CB // C
    HW = H * W
    L = N * HW
    f32 = jnp.float32

    # Batch-on-lanes activation slab (C, N*HW); this tiny (8 KiB) transpose is the
    # only wrapper-side layout work and fuses under jit.
    x2d = jnp.transpose(x_nchw.astype(f32), (1, 0, 2, 3)).reshape(C, L)

    flops = 2 * L * (CB * 9 * C + CB * 9 * CB + C * CB)
    bytes_accessed = 4 * (2 * C * L + w0big.size + w1big.size + sel.size + masks.size)

    out2d = pl.pallas_call(
        _make_kernel(N, C, B, H, W),
        out_shape=jax.ShapeDtypeStruct((C, L), f32),
        grid=(1,),
        in_specs=[
            pl.BlockSpec((C, L), lambda i: (0, 0)),
            pl.BlockSpec((CB, 9 * C), lambda i: (0, 0)),
            pl.BlockSpec((CB, 9 * CB), lambda i: (0, 0)),
            pl.BlockSpec((C, CB), lambda i: (0, 0)),
            pl.BlockSpec((8, L), lambda i: (0, 0)),
        ],
        out_specs=pl.BlockSpec((C, L), lambda i: (0, 0)),
        compiler_params=pltpu.CompilerParams(
            dimension_semantics=("arbitrary",),
            vmem_limit_bytes=4 * 1024 * 1024),
        cost_estimate=pl.CostEstimate(flops=flops, transcendentals=2 * CB,
                                      bytes_accessed=bytes_accessed),
    )(x2d, w0big, w1big, sel, masks)

    return jnp.transpose(out2d.reshape(C, N, H, W), (1, 0, 2, 3))


def branch_block(x, w0, b0, w1, b1, *, branches=2):
    """Convenience wrapper (packs per call).  b0/b1 are accepted for API parity
    but unused: affine=False training-mode BN cancels conv biases exactly."""
    del b0, b1
    packed = pack_branch_block_params(w0, w1, x.shape, branches=branches)
    return branch_block_forward(x, *packed)


def branch_block_reference(x, w0, b0, w1, b1, *, branches=2):
    """Pure-JAX reference (lax.conv, PyTorch-style layouts, WITH conv biases)."""
    eps = 1e-5
    N, C, H, W = x.shape
    B = branches
    dn = ('NCHW', 'OIHW', 'NCHW')
    y = jax.lax.conv_general_dilated(x, w0, (1, 1), 'SAME', dimension_numbers=dn)
    y = y + b0[None, :, None, None]
    mu = y.mean(axis=(0, 2, 3), keepdims=True)
    var = ((y - mu) ** 2).mean(axis=(0, 2, 3), keepdims=True)
    y = jnp.maximum((y - mu) * jax.lax.rsqrt(var + eps), 0.0)
    z = jax.lax.conv_general_dilated(y, w1, (1, 1), 'SAME', dimension_numbers=dn,
                                     feature_group_count=B)
    z = z + b1[None, :, None, None]
    mu1 = z.mean(axis=(0, 2, 3), keepdims=True)
    var1 = ((z - mu1) ** 2).mean(axis=(0, 2, 3), keepdims=True)
    z = (z - mu1) * jax.lax.rsqrt(var1 + eps)
    agg = z.reshape(N, B, C, H, W).mean(axis=1)
    return jnp.maximum(x + agg, 0.0)


if __name__ == "__main__":
    N, C, H, W = 2, 4, 16, 16
    B = 2                    # branches
    CB = C * B

    key = jax.random.PRNGKey(0)
    k1, k2, k3, k4, k5 = jax.random.split(key, 5)
    # PyTorch-shaped parameters:
    #   conv0.weight (CB, C, 3, 3), conv0.bias (CB,)
    #   conv1.weight (CB, C, 3, 3) with groups=B, conv1.bias (CB,)
    w0 = jax.random.normal(k1, (CB, C, 3, 3), jnp.float32) * 0.1
    b0 = jax.random.normal(k2, (CB,), jnp.float32) * 0.1
    w1 = jax.random.normal(k3, (CB, C, 3, 3), jnp.float32) * 0.1
    b1 = jax.random.normal(k4, (CB,), jnp.float32) * 0.1
    x = jax.random.normal(k5, (N, C, H, W), jnp.float32)

    # Pack weights ONCE, jit the forward; this is the cached per-step path.
    packed = pack_branch_block_params(w0, w1, (N, C, H, W), branches=B)
    fwd = jax.jit(branch_block_forward)
    out = jax.block_until_ready(fwd(x, *packed))

    ref = jax.block_until_ready(branch_block_reference(x, w0, b0, w1, b1, branches=B))

    assert out.shape == (N, C, H, W)
    max_err = float(jnp.max(jnp.abs(out - ref)))
    assert jnp.allclose(out, ref, rtol=1e-4, atol=1e-4), max_err

    print("KERNEL_OK")
</pallas_src>

<mosaic_0001>
module attributes {stable_mosaic.version = 11 : i64} {
  func.func @kernel(%arg0: i32, %arg1: memref<4x512xf32, #tpu.memory_space<vmem>>, %arg2: memref<8x36xf32, #tpu.memory_space<vmem>>, %arg3: memref<8x72xf32, #tpu.memory_space<vmem>>, %arg4: memref<4x8xf32, #tpu.memory_space<vmem>>, %arg5: memref<8x512xf32, #tpu.memory_space<vmem>>, %arg6: memref<4x512xf32, #tpu.memory_space<vmem>>) attributes {dimension_semantics = [#tpu.dimension_semantics<arbitrary>], iteration_bounds = array<i64: 1>, scalar_prefetch = 0 : i64, scratch_operands = 0 : i64, tpu.core_type = #tpu.core_type<tc>, window_params = [{pipeline_mode = #tpu.pipeline_mode<synchronous>, transform_indices = @transform_0, window_bounds = array<i64: 4, 512>}, {pipeline_mode = #tpu.pipeline_mode<synchronous>, transform_indices = @transform_1, window_bounds = array<i64: 8, 36>}, {pipeline_mode = #tpu.pipeline_mode<synchronous>, transform_indices = @transform_2, window_bounds = array<i64: 8, 72>}, {pipeline_mode = #tpu.pipeline_mode<synchronous>, transform_indices = @transform_3, window_bounds = array<i64: 4, 8>}, {pipeline_mode = #tpu.pipeline_mode<synchronous>, transform_indices = @transform_4, window_bounds = array<i64: 8, 512>}, {pipeline_mode = #tpu.pipeline_mode<synchronous>, transform_indices = @transform_5, window_bounds = array<i64: 4, 512>}]} {
    %c0 = arith.constant 0 : index
    %c0_0 = arith.constant 0 : index
    %0 = vector.load %arg1[%c0, %c0_0] : memref<4x512xf32, #tpu.memory_space<vmem>>, vector<4x512xf32>
    %c0_1 = arith.constant 0 : index
    %c0_2 = arith.constant 0 : index
    %1 = vector.load %arg5[%c0_1, %c0_2] : memref<8x512xf32, #tpu.memory_space<vmem>>, vector<8x512xf32>
    %c17_i32 = arith.constant 17 : i32
    %2 = tpu.dynamic_rotate %0 by %c17_i32 dim 1 : vector<4x512xf32>, i32 -> vector<4x512xf32>
    %3 = vector.extract_strided_slice %1 {offsets = [0, 0], sizes = [1, 512], strides = [1, 1]} : vector<8x512xf32> to vector<1x512xf32>
    %4 = vector.broadcast %3 : vector<1x512xf32> to vector<4x512xf32>
    %5 = arith.mulf %2, %4 : vector<4x512xf32>
    %c16_i32 = arith.constant 16 : i32
    %6 = tpu.dynamic_rotate %0 by %c16_i32 dim 1 : vector<4x512xf32>, i32 -> vector<4x512xf32>
    %7 = vector.extract_strided_slice %1 {offsets = [1, 0], sizes = [1, 512], strides = [1, 1]} : vector<8x512xf32> to vector<1x512xf32>
    %8 = vector.broadcast %7 : vector<1x512xf32> to vector<4x512xf32>
    %9 = arith.mulf %6, %8 : vector<4x512xf32>
    %c15_i32 = arith.constant 15 : i32
    %10 = tpu.dynamic_rotate %0 by %c15_i32 dim 1 : vector<4x512xf32>, i32 -> vector<4x512xf32>
    %11 = vector.extract_strided_slice %1 {offsets = [2, 0], sizes = [1, 512], strides = [1, 1]} : vector<8x512xf32> to vector<1x512xf32>
    %12 = vector.broadcast %11 : vector<1x512xf32> to vector<4x512xf32>
    %13 = arith.mulf %10, %12 : vector<4x512xf32>
    %c1_i32 = arith.constant 1 : i32
    %14 = tpu.dynamic_rotate %0 by %c1_i32 dim 1 : vector<4x512xf32>, i32 -> vector<4x512xf32>
    %15 = vector.extract_strided_slice %1 {offsets = [3, 0], sizes = [1, 512], strides = [1, 1]} : vector<8x512xf32> to vector<1x512xf32>
    %16 = vector.broadcast %15 : vector<1x512xf32> to vector<4x512xf32>
    %17 = arith.mulf %14, %16 : vector<4x512xf32>
    %c511_i32 = arith.constant 511 : i32
    %18 = tpu.dynamic_rotate %0 by %c511_i32 dim 1 : vector<4x512xf32>, i32 -> vector<4x512xf32>
    %19 = vector.extract_strided_slice %1 {offsets = [4, 0], sizes = [1, 512], strides = [1, 1]} : vector<8x512xf32> to vector<1x512xf32>
    %20 = vector.broadcast %19 : vector<1x512xf32> to vector<4x512xf32>
    %21 = arith.mulf %18, %20 : vector<4x512xf32>
    %c497_i32 = arith.constant 497 : i32
    %22 = tpu.dynamic_rotate %0 by %c497_i32 dim 1 : vector<4x512xf32>, i32 -> vector<4x512xf32>
    %23 = vector.extract_strided_slice %1 {offsets = [5, 0], sizes = [1, 512], strides = [1, 1]} : vector<8x512xf32> to vector<1x512xf32>
    %24 = vector.broadcast %23 : vector<1x512xf32> to vector<4x512xf32>
    %25 = arith.mulf %22, %24 : vector<4x512xf32>
    %c496_i32 = arith.constant 496 : i32
    %26 = tpu.dynamic_rotate %0 by %c496_i32 dim 1 : vector<4x512xf32>, i32 -> vector<4x512xf32>
    %27 = vector.extract_strided_slice %1 {offsets = [6, 0], sizes = [1, 512], strides = [1, 1]} : vector<8x512xf32> to vector<1x512xf32>
    %28 = vector.broadcast %27 : vector<1x512xf32> to vector<4x512xf32>
    %29 = arith.mulf %26, %28 : vector<4x512xf32>
    %c495_i32 = arith.constant 495 : i32
    %30 = tpu.dynamic_rotate %0 by %c495_i32 dim 1 : vector<4x512xf32>, i32 -> vector<4x512xf32>
    %31 = vector.extract_strided_slice %1 {offsets = [7, 0], sizes = [1, 512], strides = [1, 1]} : vector<8x512xf32> to vector<1x512xf32>
    %32 = vector.broadcast %31 : vector<1x512xf32> to vector<4x512xf32>
    %33 = arith.mulf %30, %32 : vector<4x512xf32>
    %34 = tpu.concatenate %5, %9, %13, %17, %0, %21, %25, %29, %33 in 0 : vector<4x512xf32>, vector<4x512xf32>, vector<4x512xf32>, vector<4x512xf32>, vector<4x512xf32>, vector<4x512xf32>, vector<4x512xf32>, vector<4x512xf32>, vector<4x512xf32> -> vector<36x512xf32>
    %c0_3 = arith.constant 0 : index
    %c0_4 = arith.constant 0 : index
    %35 = vector.load %arg2[%c0_3, %c0_4] : memref<8x36xf32, #tpu.memory_space<vmem>>, vector<8x36xf32>
    %cst = arith.constant dense<0.000000e+00> : vector<8x512xf32>
    %36 = tpu.matmul %35, %34, %cst {dimension_numbers = #tpu.dot_dimension_numbers<[1], [0], [0], [1], [0, 0, 1, 1], [], []>} : vector<8x36xf32>, vector<36x512xf32>, vector<8x512xf32> -> vector<8x512xf32>
    %cst_5 = arith.constant dense<0.000000e+00> : vector<8xf32>
    %37 = vector.multi_reduction <add>, %36, %cst_5 [1] : vector<8x512xf32> to vector<8xf32>
    %38 = vector.shape_cast %37 : vector<8xf32> to vector<8x1xf32>
    %39 = arith.mulf %36, %36 : vector<8x512xf32>
    %cst_6 = arith.constant dense<0.000000e+00> : vector<8xf32>
    %40 = vector.multi_reduction <add>, %39, %cst_6 [1] : vector<8x512xf32> to vector<8xf32>
    %41 = vector.shape_cast %40 : vector<8xf32> to vector<8x1xf32>
    %cst_7 = arith.constant 0.001953125 : f32
    %42 = vector.broadcast %cst_7 : f32 to vector<8x1xf32>
    %43 = arith.mulf %38, %42 : vector<8x1xf32>
    %cst_8 = arith.constant 0.001953125 : f32
    %44 = vector.broadcast %cst_8 : f32 to vector<8x1xf32>
    %45 = arith.mulf %41, %44 : vector<8x1xf32>
    %46 = arith.mulf %43, %43 : vector<8x1xf32>
    %47 = arith.subf %45, %46 : vector<8x1xf32>
    %cst_9 = arith.constant 9.99999974E-6 : f32
    %48 = vector.broadcast %cst_9 : f32 to vector<8x1xf32>
    %49 = arith.addf %47, %48 : vector<8x1xf32>
    %50 = math.rsqrt %49 : vector<8x1xf32>
    %51 = vector.broadcast %50 : vector<8x1xf32> to vector<8x512xf32>
    %52 = arith.mulf %36, %51 : vector<8x512xf32>
    %cst_10 = arith.constant 0.000000e+00 : f32
    %53 = vector.broadcast %cst_10 : f32 to vector<8x1xf32>
    %54 = arith.subf %53, %43 : vector<8x1xf32>
    %55 = arith.mulf %54, %50 : vector<8x1xf32>
    %56 = vector.broadcast %55 : vector<8x1xf32> to vector<8x512xf32>
    %57 = arith.addf %52, %56 : vector<8x512xf32>
    %cst_11 = arith.constant 0.000000e+00 : f32
    %58 = vector.broadcast %cst_11 : f32 to vector<8x512xf32>
    %59 = arith.maximumf %57, %58 : vector<8x512xf32>
    %c17_i32_12 = arith.constant 17 : i32
    %60 = tpu.dynamic_rotate %59 by %c17_i32_12 dim 1 : vector<8x512xf32>, i32 -> vector<8x512xf32>
    %61 = vector.extract_strided_slice %1 {offsets = [0, 0], sizes = [1, 512], strides = [1, 1]} : vector<8x512xf32> to vector<1x512xf32>
    %62 = vector.broadcast %61 : vector<1x512xf32> to vector<8x512xf32>
    %63 = arith.mulf %60, %62 : vector<8x512xf32>
    %c16_i32_13 = arith.constant 16 : i32
    %64 = tpu.dynamic_rotate %59 by %c16_i32_13 dim 1 : vector<8x512xf32>, i32 -> vector<8x512xf32>
    %65 = vector.extract_strided_slice %1 {offsets = [1, 0], sizes = [1, 512], strides = [1, 1]} : vector<8x512xf32> to vector<1x512xf32>
    %66 = vector.broadcast %65 : vector<1x512xf32> to vector<8x512xf32>
    %67 = arith.mulf %64, %66 : vector<8x512xf32>
    %c15_i32_14 = arith.constant 15 : i32
    %68 = tpu.dynamic_rotate %59 by %c15_i32_14 dim 1 : vector<8x512xf32>, i32 -> vector<8x512xf32>
    %69 = vector.extract_strided_slice %1 {offsets = [2, 0], sizes = [1, 512], strides = [1, 1]} : vector<8x512xf32> to vector<1x512xf32>
    %70 = vector.broadcast %69 : vector<1x512xf32> to vector<8x512xf32>
    %71 = arith.mulf %68, %70 : vector<8x512xf32>
    %c1_i32_15 = arith.constant 1 : i32
    %72 = tpu.dynamic_rotate %59 by %c1_i32_15 dim 1 : vector<8x512xf32>, i32 -> vector<8x512xf32>
    %73 = vector.extract_strided_slice %1 {offsets = [3, 0], sizes = [1, 512], strides = [1, 1]} : vector<8x512xf32> to vector<1x512xf32>
    %74 = vector.broadcast %73 : vector<1x512xf32> to vector<8x512xf32>
    %75 = arith.mulf %72, %74 : vector<8x512xf32>
    %c511_i32_16 = arith.constant 511 : i32
    %76 = tpu.dynamic_rotate %59 by %c511_i32_16 dim 1 : vector<8x512xf32>, i32 -> vector<8x512xf32>
    %77 = vector.extract_strided_slice %1 {offsets = [4, 0], sizes = [1, 512], strides = [1, 1]} : vector<8x512xf32> to vector<1x512xf32>
    %78 = vector.broadcast %77 : vector<1x512xf32> to vector<8x512xf32>
    %79 = arith.mulf %76, %78 : vector<8x512xf32>
    %c497_i32_17 = arith.constant 497 : i32
    %80 = tpu.dynamic_rotate %59 by %c497_i32_17 dim 1 : vector<8x512xf32>, i32 -> vector<8x512xf32>
    %81 = vector.extract_strided_slice %1 {offsets = [5, 0], sizes = [1, 512], strides = [1, 1]} : vector<8x512xf32> to vector<1x512xf32>
    %82 = vector.broadcast %81 : vector<1x512xf32> to vector<8x512xf32>
    %83 = arith.mulf %80, %82 : vector<8x512xf32>
    %c496_i32_18 = arith.constant 496 : i32
    %84 = tpu.dynamic_rotate %59 by %c496_i32_18 dim 1 : vector<8x512xf32>, i32 -> vector<8x512xf32>
    %85 = vector.extract_strided_slice %1 {offsets = [6, 0], sizes = [1, 512], strides = [1, 1]} : vector<8x512xf32> to vector<1x512xf32>
    %86 = vector.broadcast %85 : vector<1x512xf32> to vector<8x512xf32>
    %87 = arith.mulf %84, %86 : vector<8x512xf32>
    %c495_i32_19 = arith.constant 495 : i32
    %88 = tpu.dynamic_rotate %59 by %c495_i32_19 dim 1 : vector<8x512xf32>, i32 -> vector<8x512xf32>
    %89 = vector.extract_strided_slice %1 {offsets = [7, 0], sizes = [1, 512], strides = [1, 1]} : vector<8x512xf32> to vector<1x512xf32>
    %90 = vector.broadcast %89 : vector<1x512xf32> to vector<8x512xf32>
    %91 = arith.mulf %88, %90 : vector<8x512xf32>
    %92 = tpu.concatenate %63, %67, %71, %75, %59, %79, %83, %87, %91 in 0 : vector<8x512xf32>, vector<8x512xf32>, vector<8x512xf32>, vector<8x512xf32>, vector<8x512xf32>, vector<8x512xf32>, vector<8x512xf32>, vector<8x512xf32>, vector<8x512xf32> -> vector<72x512xf32>
    %c0_20 = arith.constant 0 : index
    %c0_21 = arith.constant 0 : index
    %93 = vector.load %arg3[%c0_20, %c0_21] : memref<8x72xf32, #tpu.memory_space<vmem>>, vector<8x72xf32>
    %cst_22 = arith.constant dense<0.000000e+00> : vector<8x512xf32>
    %94 = tpu.matmul %93, %92, %cst_22 {dimension_numbers = #tpu.dot_dimension_numbers<[1], [0], [0], [1], [0, 0, 1, 1], [], []>} : vector<8x72xf32>, vector<72x512xf32>, vector<8x512xf32> -> vector<8x512xf32>
    %cst_23 = arith.constant dense<0.000000e+00> : vector<8xf32>
    %95 = vector.multi_reduction <add>, %94, %cst_23 [1] : vector<8x512xf32> to vector<8xf32>
    %96 = vector.shape_cast %95 : vector<8xf32> to vector<8x1xf32>
    %97 = arith.mulf %94, %94 : vector<8x512xf32>
    %cst_24 = arith.constant dense<0.000000e+00> : vector<8xf32>
    %98 = vector.multi_reduction <add>, %97, %cst_24 [1] : vector<8x512xf32> to vector<8xf32>
    %99 = vector.shape_cast %98 : vector<8xf32> to vector<8x1xf32>
    %cst_25 = arith.constant 0.001953125 : f32
    %100 = vector.broadcast %cst_25 : f32 to vector<8x1xf32>
    %101 = arith.mulf %96, %100 : vector<8x1xf32>
    %cst_26 = arith.constant 0.001953125 : f32
    %102 = vector.broadcast %cst_26 : f32 to vector<8x1xf32>
    %103 = arith.mulf %99, %102 : vector<8x1xf32>
    %104 = arith.mulf %101, %101 : vector<8x1xf32>
    %105 = arith.subf %103, %104 : vector<8x1xf32>
    %cst_27 = arith.constant 9.99999974E-6 : f32
    %106 = vector.broadcast %cst_27 : f32 to vector<8x1xf32>
    %107 = arith.addf %105, %106 : vector<8x1xf32>
    %108 = math.rsqrt %107 : vector<8x1xf32>
    %109 = vector.broadcast %108 : vector<8x1xf32> to vector<8x512xf32>
    %110 = arith.mulf %94, %109 : vector<8x512xf32>
    %cst_28 = arith.constant 0.000000e+00 : f32
    %111 = vector.broadcast %cst_28 : f32 to vector<8x1xf32>
    %112 = arith.subf %111, %101 : vector<8x1xf32>
    %113 = arith.mulf %112, %108 : vector<8x1xf32>
    %114 = vector.broadcast %113 : vector<8x1xf32> to vector<8x512xf32>
    %115 = arith.addf %110, %114 : vector<8x512xf32>
    %c0_29 = arith.constant 0 : index
    %c0_30 = arith.constant 0 : index
    %116 = vector.load %arg4[%c0_29, %c0_30] : memref<4x8xf32, #tpu.memory_space<vmem>>, vector<4x8xf32>
    %cst_31 = arith.constant dense<0.000000e+00> : vector<4x512xf32>
    %117 = tpu.matmul %116, %115, %cst_31 {dimension_numbers = #tpu.dot_dimension_numbers<[1], [0], [0], [1], [0, 0, 1, 1], [], []>} : vector<4x8xf32>, vector<8x512xf32>, vector<4x512xf32> -> vector<4x512xf32>
    %118 = arith.addf %0, %117 : vector<4x512xf32>
    %cst_32 = arith.constant 0.000000e+00 : f32
    %119 = vector.broadcast %cst_32 : f32 to vector<4x512xf32>
    %120 = arith.maximumf %118, %119 : vector<4x512xf32>
    %c0_33 = arith.constant 0 : index
    %c0_34 = arith.constant 0 : index
    %121 = vector.load %arg6[%c0_33, %c0_34] : memref<4x512xf32, #tpu.memory_space<vmem>>, vector<4x512xf32>
    tpu.vector_store %arg6[%c0_33, %c0_34], %120 {strides = array<i32>} : memref<4x512xf32, #tpu.memory_space<vmem>>, vector<4x512xf32>,
    return
  }
  func.func @transform_0(%arg0: i32) -> (i32, i32) {
    %c0_i32 = arith.constant 0 : i32
    %c0_i32_0 = arith.constant 0 : i32
    %c0_i32_1 = arith.constant 0 : i32
    return %c0_i32, %c0_i32_0 : i32, i32
  }
  func.func @transform_1(%arg0: i32) -> (i32, i32) {
    %c0_i32 = arith.constant 0 : i32
    %c0_i32_0 = arith.constant 0 : i32
    %c0_i32_1 = arith.constant 0 : i32
    return %c0_i32, %c0_i32_0 : i32, i32
  }
  func.func @transform_2(%arg0: i32) -> (i32, i32) {
    %c0_i32 = arith.constant 0 : i32
    %c0_i32_0 = arith.constant 0 : i32
    %c0_i32_1 = arith.constant 0 : i32
    return %c0_i32, %c0_i32_0 : i32, i32
  }
  func.func @transform_3(%arg0: i32) -> (i32, i32) {
    %c0_i32 = arith.constant 0 : i32
    %c0_i32_0 = arith.constant 0 : i32
    %c0_i32_1 = arith.constant 0 : i32
    return %c0_i32, %c0_i32_0 : i32, i32
  }
  func.func @transform_4(%arg0: i32) -> (i32, i32) {
    %c0_i32 = arith.constant 0 : i32
    %c0_i32_0 = arith.constant 0 : i32
    %c0_i32_1 = arith.constant 0 : i32
    return %c0_i32, %c0_i32_0 : i32, i32
  }
  func.func @transform_5(%arg0: i32) -> (i32, i32) {
    %c0_i32 = arith.constant 0 : i32
    %c0_i32_0 = arith.constant 0 : i32
    %c0_i32_1 = arith.constant 0 : i32
    return %c0_i32, %c0_i32_0 : i32, i32
  }
}

</mosaic_0001>

<bundles_post_ra>
// kernel: branch_block_forward.1
= control target key start
LH: loop header
LB: loop body
LE: loop exit
PB: predicated region body
PF: predicated region fallthrough
CT: control target
= control target key end

     0   :  { %s1053_s22 = smov 112   ;;  %s1054_s23 = smov 111   ;;  %v1061_v4 = vmov 0.0   ;;  %v40_v5 = vlaneseq  ;;  %vm346_vm2 = vcmask 1043456   ;;  %vm364_vm9 = vcmask 293888   ;;  %s1719_s0 = inlined_call_operand.vmem [shape: f32[4,512], index: 0, kind: input, shape index: {}]   ;;  %s1720_s4 = inlined_call_operand.vmem [shape: f32[8,512], index: 4, kind: input, shape index: {}]   ;;  %s1721_s1 = inlined_call_operand.vmem [shape: f32[8,36], index: 1, kind: input, shape index: {}]   ;;  %s1722_s2 = inlined_call_operand.vmem [shape: f32[8,72], index: 2, kind: input, shape index: {}]   ;;  %s1723_s3 = inlined_call_operand.vmem [shape: f32[4,8], index: 3, kind: input, shape index: {}]   ;;  %s1724_s5 = inlined_call_operand.vmem [shape: f32[4,512], index: 5, kind: output, shape index: {}]  }
   0x1   :  { %v1095_v0 = vld [vmem:[%s1719_s0 + $0x8] sm:$0xff]  ;;  %v1100_v1 = vld [vmem:[%s1719_s0] sm:$0xff]  ;;  %s1055_s24 = smov 127   ;;  %s1056_s25 = smov 113   ;;  %444 = vmatprep.mubr.f32.mxu0 %v1061_v4  ;;  %515 = vmatprep.mubr.f32.mxu1 %v1061_v4  ;;  %v1298_v63 = vld [vmem:[%s1720_s4 + $0x10] sm:$0xff]  ;;  %vm685_vm10 = vcmask 588800  }
   0x2   :  { %236 = vrot.lane.b32.xlu0 %v1095_v0, %s1053_s22  ;;  %232 = vrot.lane.b32.xlu1 %v1100_v1, %s1053_s22  ;;  %v1108_v2 = vcombine.high %v1100_v1, %v1100_v1  ;;  %s1057_s26 = smov 1   ;;  %v1136_v3 = vcombine.high %v1095_v0, %v1095_v0  ;;  %s1058_s27 = smov 16   ;;  %v1180_v8 = vshrl.u32 %v40_v5, 7  ;;  %v1185_v11 = vand.u32 127, %v40_v5  ;;  %v1190_v13 = vld [vmem:[%s1720_s4 + $0x8] sm:$0xff]  ;;  %v1212_v20 = vld [vmem:[%s1720_s4] sm:$0xff] }
   0x3   :  { %s1059_s28 = smov 15   ;;  %s1060_s29 = smov 17   ;;  %vm862_vm11 = vcmask 64512  }
   0x4   :  { %v1183_v9 = vsub.s32 7, %v1180_v8  ;;  %v1193_v14 = vsub.s32 6, %v1180_v8  ;;  %vm273_vm0 = vcmp.lt.s32.totalorder %v1185_v11, 111  ;;  %vm240_vm1 = vcmp.lt.s32.totalorder %v1185_v11, 112 }
   0x5   :  { %v1207_v19 = vsub.s32 4, %v1180_v8  ;;  %v1220_v23 = vsub.s32 5, %v1180_v8  ;;  %vm174_vm3 = vcmp.lt.s32.totalorder %v1185_v11, 127  ;;  %vm207_vm4 = vcmp.lt.s32.totalorder %v1185_v11, 113 }
   0x6   :  { %267 = vrot.lane.b32.xlu1 %v1108_v2, %s1054_s23  ;;  %234 = vrot.lane.b32.xlu0 %v1108_v2, %s1053_s22  ;;  %v1198_v15 = vrot.slane %v1190_v13, %v1183_v9  ;;  %v1216_v21 = vrot.slane %v1190_v13, %v1193_v14  ;;  %v1231_v27 = vrot.slane %v1212_v20, %v1193_v14  ;;  %v1291_v60 = vsub.s32 3, %v1180_v8 }
   0x7   :  { %v1235_v28 = vrot.slane %v1190_v13, %v1207_v19  ;;  %v1244_v31 = vrot.slane %v1212_v20, %v1183_v9  ;;  %v1248_v32 = vrot.slane %v1190_v13, %v1220_v23  ;;  %v1257_v36 = vrot.slane %v1212_v20, %v1220_v23 }
   0x8   :  { %v1267_v40 = vrot.slane %v1212_v20, %v1207_v19  ;;  %vm141_vm5 = vcmp.lt.s32.totalorder %v1185_v11, 1  ;;  %vm108_vm6 = vcmp.lt.s32.totalorder %v1185_v11, 15  ;;  %vm75_vm7 = vcmp.lt.s32.totalorder %v1185_v11, 16 }
   0x9   :  { %vm42_vm8 = vcmp.lt.s32.totalorder %v1185_v11, 17 }
   0xa   :  { %168 = vrot.lane.b32.xlu1 %v1108_v2, %s1055_s24  ;;  %269 = vrot.lane.b32.xlu0 %v1095_v0, %s1054_s23 }
   0xe   :  { %201 = vrot.lane.b32.xlu1 %v1108_v2, %s1056_s25  ;;  %170 = vrot.lane.b32.xlu0 %v1095_v0, %s1055_s24 }
  0x12   :  { %265 = vrot.lane.b32.xlu1 %v1100_v1, %s1054_s23  ;;  %203 = vrot.lane.b32.xlu0 %v1095_v0, %s1056_s25 }
  0x16   :  { %199 = vrot.lane.b32.xlu1 %v1100_v1, %s1056_s25  ;;  %166 = vrot.lane.b32.xlu0 %v1100_v1, %s1055_s24 }
  0x1a   :  { %135 = vrot.lane.b32.xlu1 %v1108_v2, %s1057_s26  ;;  %133 = vrot.lane.b32.xlu0 %v1100_v1, %s1057_s26 }
  0x1e   :  { %139 = vrot.lane.b32.xlu1 %v1136_v3, %s1057_s26  ;;  %238 = vrot.lane.b32.xlu0 %v1136_v3, %s1053_s22 }
  0x22   :  { %67 = vrot.lane.b32.xlu1 %v1100_v1, %s1058_s27  ;;  %271 = vrot.lane.b32.xlu0 %v1136_v3, %s1054_s23 }
  0x26   :  { %100 = vrot.lane.b32.xlu1 %v1100_v1, %s1059_s28  ;;  %69 = vrot.lane.b32.xlu0 %v1108_v2, %s1058_s27 }
  0x2a   :  { %172 = vrot.lane.b32.xlu1 %v1136_v3, %s1055_s24  ;;  %102 = vrot.lane.b32.xlu0 %v1108_v2, %s1059_s28 }
  0x2e   :  { %73 = vrot.lane.b32.xlu1 %v1136_v3, %s1058_s27  ;;  %205 = vrot.lane.b32.xlu0 %v1136_v3, %s1056_s25 }
  0x32   :  { %32 = vrot.lane.b32.xlu1 %v1100_v1, %s1060_s29  ;;  %106 = vrot.lane.b32.xlu0 %v1136_v3, %s1059_s28 }
  0x36   :  { %137 = vrot.lane.b32.xlu1 %v1095_v0, %s1057_s26  ;;  %34 = vrot.lane.b32.xlu0 %v1108_v2, %s1060_s29 }
  0x3a   :  { %71 = vrot.lane.b32.xlu1 %v1095_v0, %s1058_s27  ;;  %38 = vrot.lane.b32.xlu0 %v1136_v3, %s1060_s29 }
  0x3e   :  { %36 = vrot.lane.b32.xlu1 %v1095_v0, %s1060_s29  ;;  %104 = vrot.lane.b32.xlu0 %v1095_v0, %s1059_s28 }
  0x74   :  { %v1176_v6 = vpop.permute.xlu0 %236  ;;  %v1178_v7 = vpop.permute.xlu1 %232 }
  0x78   :  { %v268_v10 = vpop.permute.xlu1 %267  ;;  %v235_v12 = vpop.permute.xlu0 %234 }
  0x79   :  { %v242_v24 = vsel %vm240_vm1, %v235_v12, %v1176_v6  ;;  %v243_v33 = vsel %vm240_vm1, %v1178_v7, %v235_v12 }
  0x7a   :  { %v262_v29 = vmul.f32 %v1216_v21, %v242_v24  ;;  %v261_v41 = vmul.f32 %v1231_v27, %v243_v33 }
  0x7c   :  { %v169_v16 = vpop.permute.xlu1 %168  ;;  %v1201_v17 = vpop.permute.xlu0 %269  ;;  %v339_v42 = vrot.slane %v262_v29, 4  ;;  %v338_v51 = vrot.slane %v261_v41, 4  ;;  %v1331_v29 = vsub.s32 2, %v1180_v8 }
  0x7d   :  { %v275_v18 = vsel %vm273_vm0, %v268_v10, %v1201_v17 }
  0x7e   :  { %v295_v22 = vmul.f32 %v1198_v15, %v275_v18  ;;  %v1356_v41 = vrot.slane %v1190_v13, %v1331_v29 }
  0x80   :  { %v202_v25 = vpop.permute.xlu1 %201  ;;  %1026 = vmatprep.subr.msk.mxu0 %vm346_vm2, %v295_v22  ;;  %v1227_v26 = vpop.permute.xlu0 %170 }
  0x81   :  { %v176_v30 = vsel %vm174_vm3, %v169_v16, %v1227_v26 }
  0x82   :  { %v196_v37 = vmul.f32 %v1235_v28, %v176_v30 }
  0x84   :  { %v266_v34 = vpop.permute.xlu1 %265  ;;  %v1253_v35 = vpop.permute.xlu0 %203  ;;  %v327_v48 = vrot.slane %v196_v37, 4 }
  0x85   :  { %v276_v38 = vsel %vm273_vm0, %v266_v34, %v268_v10  ;;  %v209_v39 = vsel %vm207_vm4, %v202_v25, %v1253_v35  ;;  %v1316_v10 = vrot.slane %v1190_v13, %v1291_v60 }
  0x86   :  { %v294_v43 = vmul.f32 %v1244_v31, %v276_v38  ;;  %v229_v44 = vmul.f32 %v1248_v32, %v209_v39  ;;  %v356_v58 = vsel %vm346_vm2, %v1108_v2, %v327_v48  ;;  %v1303_v2 = vld [vmem:[%s1720_s4 + $0x18] sm:$0xff] }
  0x87   :  { %v1312_v5 = vrot.slane %v1303_v2, %v1183_v9  ;;  %v1351_v39 = vrot.slane %v1303_v2, %v1207_v19 }
  0x88   :  { %v1272_v45 = vpop.permute.xlu1 %199  ;;  %1027 = vmatpush1.msk.msra.mxu0 %vm346_vm2, %v294_v43  ;;  %v167_v46 = vpop.permute.xlu0 %166  ;;  %v360_v47 = vsel %vm346_vm2, %v229_v44, %v339_v42  ;;  %v1370_v44 = vsub.s32 1, %v1180_v8 }
  0x89   :  { %v210_v49 = vsel %vm207_vm4, %v1272_v45, %v202_v25  ;;  %v177_v50 = vsel %vm174_vm3, %v167_v46, %v169_v16  ;;  %404 = vmatprep.subr.mxu0 %v360_v47 }
  0x8a   :  { %v228_v52 = vmul.f32 %v1257_v36, %v210_v49  ;;  %v195_v53 = vmul.f32 %v1267_v40, %v177_v50  ;;  %v1376_v49 = vrot.slane %v1298_v63, %v1220_v23  ;;  %v1380_v50 = vrot.slane %v1303_v2, %v1220_v23 }
  0x8c   :  { %v326_v54 = vrot.slane %v195_v53, 4  ;;  %v1283_v55 = vpop.permute.xlu1 %135  ;;  %v134_v56 = vpop.permute.xlu0 %133  ;;  %v359_v57 = vsel %vm346_vm2, %v228_v52, %v338_v51 }
  0x8d   :  { %405 = vmatpush1.msra.mxu0 %v359_v57  ;;  %v144_v18 = vsel %vm141_vm5, %v134_v56, %v1283_v55 }
  0x8e   :  { %406 = vmatprep.subr.mxu0 %v356_v58  ;;  %v355_v59 = vsel %vm346_vm2, %v1100_v1, %v326_v54  ;;  %v1308_v1 = vrot.slane %v1298_v63, %v1183_v9  ;;  %v163_v30 = vmul.f32 %v1316_v10, %v144_v18 }
  0x8f   :  { %407 = vmatpush1.msra.mxu0 %v355_v59 }
  0x90   :  { %v1293_v61 = vpop.permute.xlu1 %139  ;;  %v239_v62 = vpop.permute.xlu0 %238  ;;  %v315_v43 = vrot.slane %v163_v30, 4 }
  0x91   :  { %v241_v38 = vsel %vm240_vm1, %v1176_v6, %v239_v62  ;;  %v244_v42 = vsel %vm240_vm1, %v239_v62, %v1178_v7  ;;  %v1367_v6 = vrot.slane %v1298_v63, %v1207_v19  ;;  %v145_v53 = vsel %vm141_vm5, %v1293_v61, %v134_v56 }
  0x92   :  { %v1406_v56 = vrot.slane %v1212_v20, %v1331_v29 }
  0x94   :  { %v1318_v12 = vpop.permute.xlu1 %67  ;;  %v272_v16 = vpop.permute.xlu0 %271 }
  0x95   :  { %v274_v22 = vsel %vm273_vm0, %v1201_v17, %v272_v16  ;;  %v277_v24 = vsel %vm273_vm0, %v272_v16, %v266_v34  ;;  %v1339_v17 = vrot.slane %v1298_v63, %v1193_v14  ;;  %v1343_v34 = vrot.slane %v1303_v2, %v1193_v14 }
  0x96   :  { %v296_v9 = vmul.f32 %v1308_v1, %v274_v22  ;;  %v297_v25 = vmul.f32 %v1312_v5, %v277_v24  ;;  %v1360_v14 = vrot.slane %v1212_v20, %v1291_v60  ;;  %v49_v16 = vsub.s32 0, %v1180_v8 }
  0x97   :  { %v263_v7 = vmul.f32 %v1339_v17, %v241_v38  ;;  %v264_v23 = vmul.f32 %v1343_v34, %v244_v42 }
  0x98   :  { %v101_v33 = vpop.permute.xlu1 %100  ;;  %1029 = vmatprep.subr.msk.mxu1 %vm346_vm2, %v297_v25  ;;  %v1335_v37 = vpop.permute.xlu0 %69  ;;  %v162_v18 = vmul.f32 %v1360_v14, %v145_v53 }
  0x99   :  { %1030 = vmatpush1.msk.msra.mxu1 %vm346_vm2, %v296_v9  ;;  %v340_v22 = vrot.slane %v263_v7, 4  ;;  %v341_v25 = vrot.slane %v264_v23, 4  ;;  %v78_v8 = vsel %vm75_vm7, %v1318_v12, %v1335_v37 }
  0x9a   :  { %v314_v53 = vrot.slane %v162_v18, 4 }
  0x9c   :  { %v173_v47 = vpop.permute.xlu1 %172  ;;  %v1372_v48 = vpop.permute.xlu0 %102 }
  0x9d   :  { %v175_v19 = vsel %vm174_vm3, %v1227_v26, %v173_v47  ;;  %v178_v51 = vsel %vm174_vm3, %v173_v47, %v167_v46  ;;  %v111_v52 = vsel %vm108_vm6, %v101_v33, %v1372_v48  ;;  %v1401_v46 = vrot.slane %v1190_v13, %v1370_v44 }
  0x9e   :  { %v198_v54 = vmul.f32 %v1351_v39, %v178_v51  ;;  %v130_v57 = vmul.f32 %v1356_v41, %v111_v52  ;;  %v197_v26 = vmul.f32 %v1367_v6, %v175_v19  ;;  %v1432_v52 = vrot.slane %v1190_v13, %v49_v16 }
  0x9f   :  { %v97_v23 = vmul.f32 %v1401_v46, %v78_v8  ;;  %v1445_v13 = vrot.slane %v1298_v63, %v1291_v60 }
  0xa0   :  { %v74_v58 = vpop.permute.xlu1 %73  ;;  %v206_v59 = vpop.permute.xlu0 %205  ;;  %v352_v62 = vsel %vm346_vm2, %v130_v57, %v315_v43  ;;  %v329_v30 = vrot.slane %v198_v54, 4  ;;  %v328_v43 = vrot.slane %v197_v26, 4 }
  0xa1   :  { %v208_v24 = vsel %vm207_vm4, %v1253_v35, %v206_v59  ;;  %v211_v9 = vsel %vm207_vm4, %v206_v59, %v1272_v45  ;;  %408 = vmatprep.subr.mxu0 %v352_v62  ;;  %v1426_v45 = vrot.slane %v1212_v20, %v1370_v44  ;;  %v79_v26 = vsel %vm75_vm7, %v74_v58, %v1318_v12 }
  0xa2   :  { %v230_v38 = vmul.f32 %v1376_v49, %v208_v24  ;;  %v231_v42 = vmul.f32 %v1380_v50, %v211_v9  ;;  %v358_v57 = vsel %vm346_vm2, %v1136_v3, %v329_v30  ;;  %v1450_v3 = vrot.slane %v1303_v2, %v1291_v60 }
  0xa3   :  { %v96_v24 = vmul.f32 %v1426_v45, %v79_v26  ;;  %v1467_v30 = vrot.slane %v1298_v63, %v1370_v44 }
  0xa4   :  { %v33_v47 = vpop.permute.xlu1 %32  ;;  %v107_v7 = vpop.permute.xlu0 %106  ;;  %v362_v35 = vsel %vm346_vm2, %v231_v42, %v341_v25  ;;  %v361_v19 = vsel %vm346_vm2, %v230_v38, %v340_v22  ;;  %v303_v22 = vrot.slane %v97_v23, 4  ;;  %v1460_v25 = vrot.slane %v1212_v20, %v49_v16 }
  0xa5   :  { %v112_v51 = vsel %vm108_vm6, %v107_v7, %v101_v33  ;;  %475 = vmatprep.subr.mxu1 %v362_v35  ;;  %v357_v33 = vsel %vm346_vm2, %v1095_v0, %v328_v43  ;;  %v1472_v38 = vrot.slane %v1303_v2, %v1370_v44  ;;  %v1476_v20 = vrot.slane %v1303_v2, %v49_v16 }
  0xa6   :  { %v129_v54 = vmul.f32 %v1406_v56, %v112_v51  ;;  %476 = vmatpush1.msra.mxu1 %v361_v19  ;;  %v1487_v44 = vrot.slane %v1298_v63, %v1331_v29  ;;  %v302_v51 = vrot.slane %v96_v24, 4 }
  0xa7   :  { %477 = vmatprep.subr.mxu1 %v358_v57 }
  0xa8   :  { %v138_v59 = vpop.permute.xlu1 %137  ;;  %478 = vmatpush1.msra.mxu1 %v357_v33  ;;  %v35_v62 = vpop.permute.xlu0 %34  ;;  %v351_v18 = vsel %vm346_vm2, %v129_v54, %v314_v53  ;;  %v1496_v54 = vrot.slane %v1298_v63, %v49_v16 }
  0xa9   :  { %v143_v12 = vsel %vm141_vm5, %v1283_v55, %v138_v59  ;;  %v45_v0 = vsel %vm42_vm8, %v33_v47, %v35_v62  ;;  %409 = vmatpush1.msra.mxu0 %v351_v18  ;;  %v142_v60 = vsel %vm141_vm5, %v138_v59, %v1293_v61 }
  0xaa   :  { %v64_v9 = vmul.f32 %v1432_v52, %v45_v0  ;;  %v164_v55 = vmul.f32 %v1445_v13, %v143_v12  ;;  %v165_v53 = vmul.f32 %v1450_v3, %v142_v60 }
  0xac   :  { %v72_v42 = vpop.permute.xlu1 %71  ;;  %v39_v8 = vpop.permute.xlu0 %38  ;;  %v348_v43 = vsel %vm346_vm2, %v64_v9, %v303_v22  ;;  %v317_v12 = vrot.slane %v165_v53, 4 }
  0xad   :  { %v76_v61 = vsel %vm75_vm7, %v72_v42, %v74_v58  ;;  %v77_v35 = vsel %vm75_vm7, %v1335_v37, %v72_v42  ;;  %v46_v19 = vsel %vm42_vm8, %v39_v8, %v33_v47  ;;  %410 = vmatprep.subr.mxu0 %v348_v43  ;;  %v1493_v58 = vrot.slane %v1303_v2, %v1331_v29  ;;  %v363_v37 = vld [vmem:[%s1721_s1] sm:$0xff] }
  0xae   :  { %v63_v23 = vmul.f32 %v1460_v25, %v46_v19  ;;  %v316_v47 = vrot.slane %v164_v55, 4  ;;  %v98_v57 = vmul.f32 %v1467_v30, %v77_v35  ;;  %v99_v26 = vmul.f32 %v1472_v38, %v76_v61 }
  0xb0   :  { %v37_v33 = vpop.permute.xlu1 %36  ;;  %v105_v59 = vpop.permute.xlu0 %104  ;;  %v347_v18 = vsel %vm346_vm2, %v63_v23, %v302_v51 }
  0xb1   :  { %v43_v2 = vsel %vm42_vm8, %v37_v33, %v39_v8  ;;  %v44_v63 = vsel %vm42_vm8, %v35_v62, %v37_v33  ;;  %v109_v29 = vsel %vm108_vm6, %v105_v59, %v107_v7  ;;  %v110_v16 = vsel %vm108_vm6, %v1372_v48, %v105_v59  ;;  %411 = vmatpush1.msra.mxu0 %v347_v18 }
  0xb2   :  { %v66_v0 = vmul.f32 %v1476_v20, %v43_v2  ;;  %v131_v22 = vmul.f32 %v1487_v44, %v110_v16  ;;  %v132_v24 = vmul.f32 %v1493_v58, %v109_v29  ;;  %1028 = vmatmul.mubr.msk.f32.vlgmr.msra.gmra.mxu0 %vm364_vm9, %v363_v37  ;;  %v65_v9 = vmul.f32 %v1496_v54, %v44_v63 }
  0xb3   :  { %753 = vmatprep.mubr.f32.mxu0 %v1061_v4  ;;  %v305_v62 = vrot.slane %v99_v26, 4  ;;  %v304_v48 = vrot.slane %v98_v57, 4 }
  0xb4   :  { %v354_v7 = vsel %vm346_vm2, %v132_v24, %v317_v12  ;;  %v353_v60 = vsel %vm346_vm2, %v131_v22, %v316_v47 }
  0xb5   :  { %479 = vmatprep.subr.mxu1 %v354_v7  ;;  %v350_v55 = vsel %vm346_vm2, %v66_v0, %v305_v62  ;;  %v349_v42 = vsel %vm346_vm2, %v65_v9, %v304_v48 }
  0xb6   :  { %480 = vmatpush1.msra.mxu1 %v353_v60 }
  0xb7   :  { %481 = vmatprep.subr.mxu1 %v350_v55 }
  0xb8   :  { %482 = vmatpush1.msra.mxu1 %v349_v42 }
  0xb9   :  { %1031 = vmatmul.mubr.msk.f32.vlgmr.msra.gmra.mxu1 %vm364_vm9, %v363_v37 }
  0xba   :  { %824 = vmatprep.mubr.f32.mxu1 %v1061_v4 }
 0x172   :  { %v446_v8 = vpop.f32.mrf.mxu0 }
 0x173   :  { %v527_v61 = vmul.f32 %v446_v8, %v446_v8 }
 0x174   :  { %v448_v43 = vpop.f32.mrf.mxu0 }
 0x175   :  { %v528_v35 = vmul.f32 %v448_v43, %v448_v43  ;;  %v522_v19 = vadd.f32 %v448_v43, %v446_v8 }
 0x177   :  { %v531_v47 = vadd.f32 %v528_v35, %v527_v61 }
 0x179   :  { %v517_v51 = vpop.f32.mrf.mxu1 }
 0x17a   :  { %v529_v53 = vmul.f32 %v517_v51, %v517_v51  ;;  %v523_v23 = vadd.f32 %v522_v19, %v517_v51 }
 0x17b   :  { %v519_v57 = vpop.f32.mrf.mxu1 }
 0x17c   :  { %v524_v26 = vadd.f32 %v523_v23, %v519_v57  ;;  %v530_v33 = vmul.f32 %v519_v57, %v519_v57  ;;  %v532_v59 = vadd.f32 %v531_v47, %v529_v53 }
 0x17e   :  { %525 = vadd.xlane.f32.xlu0 %v524_v26  ;;  %v533_v18 = vadd.f32 %v532_v59, %v530_v33 }
 0x180   :  { %534 = vadd.xlane.f32.xlu1 %v533_v18 }
 0x207   :  { %v526_v2 = vpop.xlane.xlu0 %525 }
 0x208   :  { %v536_v37 = vmul.f32 0.001953125, %v526_v2 }
 0x209   :  { %v535_v63 = vpop.xlane.xlu1 %534 }
 0x20a   :  { %v538_v29 = vmul.f32 %v536_v37, %v536_v37  ;;  %v537_v16 = vmul.f32 0.001953125, %v535_v63  ;;  %v546_v22 = vsub.f32 0.0, %v536_v37 }
 0x20c   :  { %v539_v12 = vsub.f32 %v537_v16, %v538_v29 }
 0x20e   :  { %v540_v0 = vadd.f32 1e-05, %v539_v12 }
 0x210   :  { %1047 = vrsqrt.f32 %v540_v0 }
 0x21d   :  { %v1048_v24 = vpop.eup %1047 }
 0x21e   :  { %v544_v9 = vmul.f32 %v1048_v24, %v517_v51  ;;  %v547_v62 = vmul.f32 %v1048_v24, %v546_v22  ;;  %v543_v7 = vmul.f32 %v1048_v24, %v448_v43  ;;  %v542_v60 = vmul.f32 %v1048_v24, %v446_v8 }
 0x21f   :  { %v545_v8 = vmul.f32 %v1048_v24, %v519_v57 }
 0x220   :  { %v550_v48 = vadd.f32 %v547_v62, %v544_v9  ;;  %v549_v55 = vadd.f32 %v547_v62, %v543_v7  ;;  %v548_v35 = vadd.f32 %v547_v62, %v542_v60 }
 0x221   :  { %v551_v43 = vadd.f32 %v547_v62, %v545_v8 }
 0x222   :  { %v1525_v42 = vmax.f32 %v550_v48, 0.0  ;;  %v1527_v61 = vmax.f32 %v549_v55, 0.0  ;;  %v1533_v19 = vmax.f32 %v548_v35, 0.0 }
 0x223   :  { %v1547_v51 = vmax.f32 %v551_v43, 0.0 }
 0x224   :  { %672 = vrot.lane.b32.xlu1 %v1525_v42, %s1054_s23  ;;  %670 = vrot.lane.b32.xlu0 %v1527_v61, %s1054_s23 }
 0x228   :  { %654 = vrot.lane.b32.xlu1 %v1527_v61, %s1053_s22  ;;  %668 = vrot.lane.b32.xlu0 %v1533_v19, %s1054_s23 }
 0x22c   :  { %652 = vrot.lane.b32.xlu1 %v1533_v19, %s1053_s22  ;;  %656 = vrot.lane.b32.xlu0 %v1525_v42, %s1053_s22 }
 0x230   :  { %640 = vrot.lane.b32.xlu1 %v1525_v42, %s1056_s25  ;;  %638 = vrot.lane.b32.xlu0 %v1527_v61, %s1056_s25 }
 0x234   :  { %636 = vrot.lane.b32.xlu1 %v1533_v19, %s1056_s25  ;;  %674 = vrot.lane.b32.xlu0 %v1547_v51, %s1054_s23 }
 0x238   :  { %624 = vrot.lane.b32.xlu1 %v1525_v42, %s1055_s24  ;;  %622 = vrot.lane.b32.xlu0 %v1527_v61, %s1055_s24 }
 0x23c   :  { %620 = vrot.lane.b32.xlu1 %v1533_v19, %s1055_s24  ;;  %658 = vrot.lane.b32.xlu0 %v1547_v51, %s1053_s22 }
 0x240   :  { %604 = vrot.lane.b32.xlu1 %v1533_v19, %s1057_s26  ;;  %642 = vrot.lane.b32.xlu0 %v1547_v51, %s1056_s25 }
 0x244   :  { %626 = vrot.lane.b32.xlu1 %v1547_v51, %s1055_s24  ;;  %606 = vrot.lane.b32.xlu0 %v1527_v61, %s1057_s26 }
 0x248   :  { %588 = vrot.lane.b32.xlu1 %v1533_v19, %s1059_s28  ;;  %610 = vrot.lane.b32.xlu0 %v1547_v51, %s1057_s26 }
 0x24c   :  { %594 = vrot.lane.b32.xlu1 %v1547_v51, %s1059_s28  ;;  %590 = vrot.lane.b32.xlu0 %v1527_v61, %s1059_s28 }
 0x250   :  { %574 = vrot.lane.b32.xlu1 %v1527_v61, %s1058_s27  ;;  %572 = vrot.lane.b32.xlu0 %v1533_v19, %s1058_s27 }
 0x254   :  { %578 = vrot.lane.b32.xlu1 %v1547_v51, %s1058_s27  ;;  %608 = vrot.lane.b32.xlu0 %v1525_v42, %s1057_s26 }
 0x258   :  { %558 = vrot.lane.b32.xlu1 %v1527_v61, %s1060_s29  ;;  %556 = vrot.lane.b32.xlu0 %v1533_v19, %s1060_s29 }
 0x25c   :  { %562 = vrot.lane.b32.xlu1 %v1547_v51, %s1060_s29  ;;  %592 = vrot.lane.b32.xlu0 %v1525_v42, %s1059_s28 }
 0x260   :  { %560 = vrot.lane.b32.xlu1 %v1525_v42, %s1060_s29  ;;  %576 = vrot.lane.b32.xlu0 %v1525_v42, %s1058_s27 }
 0x296   :  { %v673_v53 = vpop.permute.xlu1 %672  ;;  %v671_v23 = vpop.permute.xlu0 %670 }
 0x297   :  { %v677_v47 = vsel %vm273_vm0, %v671_v23, %v673_v53 }
 0x298   :  { %v681_v57 = vmul.f32 %v677_v47, %v1198_v15 }
 0x29a   :  { %v655_v26 = vpop.permute.xlu1 %654  ;;  %703 = vmatprep.subr.mxu0 %v681_v57  ;;  %v669_v33 = vpop.permute.xlu0 %668 }
 0x29b   :  { %v678_v59 = vsel %vm273_vm0, %v669_v33, %v671_v23 }
 0x29c   :  { %v680_v18 = vmul.f32 %v678_v59, %v1244_v31 }
 0x29e   :  { %v653_v2 = vpop.permute.xlu1 %652  ;;  %704 = vmatpush1.msra.mxu0 %v680_v18  ;;  %v657_v37 = vpop.permute.xlu0 %656 }
 0x29f   :  { %v662_v63 = vsel %vm240_vm1, %v653_v2, %v655_v26  ;;  %v661_v29 = vsel %vm240_vm1, %v655_v26, %v657_v37 }
 0x2a0   :  { %v664_v16 = vmul.f32 %v662_v63, %v1231_v27  ;;  %v665_v15 = vmul.f32 %v661_v29, %v1216_v21 }
 0x2a2   :  { %v641_v12 = vpop.permute.xlu1 %640  ;;  %705 = vmatprep.subr.mxu0 %v665_v15  ;;  %v639_v0 = vpop.permute.xlu0 %638 }
 0x2a3   :  { %v645_v22 = vsel %vm207_vm4, %v639_v0, %v641_v12  ;;  %706 = vmatpush1.msra.mxu0 %v664_v16 }
 0x2a4   :  { %v649_v31 = vmul.f32 %v645_v22, %v1248_v32 }
 0x2a6   :  { %v637_v24 = vpop.permute.xlu1 %636  ;;  %707 = vmatprep.subr.mxu0 %v649_v31  ;;  %v675_v9 = vpop.permute.xlu0 %674 }
 0x2a7   :  { %v646_v62 = vsel %vm207_vm4, %v637_v24, %v639_v0  ;;  %v676_v27 = vsel %vm273_vm0, %v673_v53, %v675_v9  ;;  %v679_v21 = vsel %vm273_vm0, %v675_v9, %v669_v33 }
 0x2a8   :  { %v648_v7 = vmul.f32 %v646_v62, %v1257_v36  ;;  %v682_v60 = vmul.f32 %v676_v27, %v1308_v1  ;;  %v683_v48 = vmul.f32 %v679_v21, %v1312_v5 }
 0x2aa   :  { %v625_v55 = vpop.permute.xlu1 %624  ;;  %708 = vmatpush1.msra.mxu0 %v648_v7  ;;  %774 = vmatprep.subr.mxu1 %v683_v48  ;;  %v623_v32 = vpop.permute.xlu0 %622 }
 0x2ab   :  { %v629_v35 = vsel %vm174_vm3, %v623_v32, %v625_v55  ;;  %775 = vmatpush1.msra.mxu1 %v682_v60 }
 0x2ac   :  { %v633_v8 = vmul.f32 %v629_v35, %v1235_v28 }
 0x2ae   :  { %v621_v43 = vpop.permute.xlu1 %620  ;;  %709 = vmatprep.subr.mxu0 %v633_v8  ;;  %v659_v53 = vpop.permute.xlu0 %658 }
 0x2af   :  { %v630_v36 = vsel %vm174_vm3, %v621_v43, %v623_v32  ;;  %v660_v1 = vsel %vm240_vm1, %v657_v37, %v659_v53  ;;  %v663_v5 = vsel %vm240_vm1, %v659_v53, %v653_v2 }
 0x2b0   :  { %v632_v23 = vmul.f32 %v630_v36, %v1267_v40  ;;  %v666_v47 = vmul.f32 %v660_v1, %v1339_v17  ;;  %v667_v57 = vmul.f32 %v663_v5, %v1343_v34 }
 0x2b2   :  { %v605_v26 = vpop.permute.xlu1 %604  ;;  %710 = vmatpush1.msra.mxu0 %v632_v23  ;;  %776 = vmatprep.subr.mxu1 %v667_v57  ;;  %v643_v28 = vpop.permute.xlu0 %642 }
 0x2b3   :  { %v644_v33 = vsel %vm207_vm4, %v641_v12, %v643_v28  ;;  %v647_v59 = vsel %vm207_vm4, %v643_v28, %v637_v24  ;;  %711 = vmatprep.subr.mxu0 %v1527_v61  ;;  %777 = vmatpush1.msra.mxu1 %v666_v47 }
 0x2b4   :  { %v650_v18 = vmul.f32 %v644_v33, %v1376_v49  ;;  %v651_v40 = vmul.f32 %v647_v59, %v1380_v50  ;;  %712 = vmatpush1.msra.mxu0 %v1533_v19 }
 0x2b6   :  { %v627_v17 = vpop.permute.xlu1 %626  ;;  %778 = vmatprep.subr.mxu1 %v651_v40  ;;  %v607_v34 = vpop.permute.xlu0 %606 }
 0x2b7   :  { %v628_v2 = vsel %vm174_vm3, %v625_v55, %v627_v17  ;;  %v631_v37 = vsel %vm174_vm3, %v627_v17, %v621_v43  ;;  %v614_v63 = vsel %vm141_vm5, %v605_v26, %v607_v34  ;;  %779 = vmatpush1.msra.mxu1 %v650_v18 }
 0x2b8   :  { %v634_v61 = vmul.f32 %v628_v2, %v1367_v6  ;;  %v635_v49 = vmul.f32 %v631_v37, %v1351_v39  ;;  %v617_v50 = vmul.f32 %v614_v63, %v1316_v10 }
 0x2ba   :  { %v589_v19 = vpop.permute.xlu1 %588  ;;  %713 = vmatprep.subr.mxu0 %v617_v50  ;;  %780 = vmatprep.subr.mxu1 %v635_v49  ;;  %v611_v29 = vpop.permute.xlu0 %610 }
 0x2bb   :  { %v615_v16 = vsel %vm141_vm5, %v611_v29, %v605_v26  ;;  %781 = vmatpush1.msra.mxu1 %v634_v61 }
 0x2bc   :  { %v616_v15 = vmul.f32 %v615_v16, %v1360_v14  ;;  %782 = vmatprep.subr.mxu1 %v1547_v51 }
 0x2bd   :  { %783 = vmatpush1.msra.mxu1 %v1525_v42 }
 0x2be   :  { %v595_v12 = vpop.permute.xlu1 %594  ;;  %714 = vmatpush1.msra.mxu0 %v616_v15  ;;  %v591_v6 = vpop.permute.xlu0 %590 }
 0x2bf   :  { %v599_v10 = vsel %vm108_vm6, %v595_v12, %v589_v19  ;;  %v598_v39 = vsel %vm108_vm6, %v589_v19, %v591_v6 }
 0x2c0   :  { %v600_v0 = vmul.f32 %v599_v10, %v1406_v56  ;;  %v601_v22 = vmul.f32 %v598_v39, %v1356_v41 }
 0x2c2   :  { %v575_v31 = vpop.permute.xlu1 %574  ;;  %715 = vmatprep.subr.mxu0 %v601_v22  ;;  %v573_v14 = vpop.permute.xlu0 %572 }
 0x2c3   :  { %v582_v51 = vsel %vm75_vm7, %v573_v14, %v575_v31  ;;  %716 = vmatpush1.msra.mxu0 %v600_v0 }
 0x2c4   :  { %v585_v42 = vmul.f32 %v582_v51, %v1401_v46 }
 0x2c6   :  { %v579_v24 = vpop.permute.xlu1 %578  ;;  %717 = vmatprep.subr.mxu0 %v585_v42  ;;  %v609_v9 = vpop.permute.xlu0 %608  ;;  %v861_v42 = vld [vmem:[%s1723_s3] sm:$0xf] }
 0x2c7   :  { %v583_v62 = vsel %vm75_vm7, %v579_v24, %v573_v14  ;;  %v612_v56 = vsel %vm141_vm5, %v609_v9, %v611_v29  ;;  %v613_v41 = vsel %vm141_vm5, %v607_v34, %v609_v9 }
 0x2c8   :  { %v584_v27 = vmul.f32 %v583_v62, %v1426_v45  ;;  %v618_v21 = vmul.f32 %v613_v41, %v1445_v13  ;;  %v619_v7 = vmul.f32 %v612_v56, %v1450_v3 }
 0x2ca   :  { %v559_v60 = vpop.permute.xlu1 %558  ;;  %718 = vmatpush1.msra.mxu0 %v584_v27  ;;  %784 = vmatprep.subr.mxu1 %v619_v7  ;;  %v557_v46 = vpop.permute.xlu0 %556 }
 0x2cb   :  { %v566_v48 = vsel %vm42_vm8, %v557_v46, %v559_v60  ;;  %785 = vmatpush1.msra.mxu1 %v618_v21  ;;  %v1051_v21 = vld [vmem:[%s1719_s0] sm:$0xff] }
 0x2cc   :  { %v569_v55 = vmul.f32 %v566_v48, %v1432_v52  ;;  %v684_v52 = vld [vmem:[%s1722_s2] sm:$0xff] }
 0x2ce   :  { %v563_v32 = vpop.permute.xlu1 %562  ;;  %719 = vmatprep.subr.mxu0 %v569_v55  ;;  %v593_v35 = vpop.permute.xlu0 %592 }
 0x2cf   :  { %v567_v45 = vsel %vm42_vm8, %v563_v32, %v557_v46  ;;  %v596_v13 = vsel %vm108_vm6, %v593_v35, %v595_v12  ;;  %v597_v3 = vsel %vm108_vm6, %v591_v6, %v593_v35 }
 0x2d0   :  { %v568_v8 = vmul.f32 %v567_v45, %v1460_v25  ;;  %v602_v43 = vmul.f32 %v597_v3, %v1487_v44  ;;  %v603_v53 = vmul.f32 %v596_v13, %v1493_v58 }
 0x2d2   :  { %v561_v36 = vpop.permute.xlu1 %560  ;;  %720 = vmatpush1.msra.mxu0 %v568_v8  ;;  %786 = vmatprep.subr.mxu1 %v603_v53  ;;  %v577_v1 = vpop.permute.xlu0 %576 }
 0x2d3   :  { %v564_v5 = vsel %vm42_vm8, %v561_v36, %v563_v32  ;;  %v580_v23 = vsel %vm75_vm7, %v577_v1, %v579_v24  ;;  %v581_v25 = vsel %vm75_vm7, %v575_v31, %v577_v1  ;;  %787 = vmatpush1.msra.mxu1 %v602_v43  ;;  %v565_v44 = vsel %vm42_vm8, %v559_v60, %v561_v36  ;;  %v1052_v60 = vld [vmem:[%s1719_s0 + $0x8] sm:$0xff] }
 0x2d4   :  { %v586_v58 = vmul.f32 %v581_v25, %v1467_v30  ;;  %v587_v47 = vmul.f32 %v580_v23, %v1472_v38  ;;  %1032 = vmatmul.mubr.msk.f32.vlgmr.msra.gmra.mxu0 %vm685_vm10, %v684_v52  ;;  %v571_v57 = vmul.f32 %v564_v5, %v1476_v20  ;;  %v570_v26 = vmul.f32 %v565_v44, %v1496_v54 }
 0x2d5   :  { %930 = vmatprep.mubr.f32.mxu0 %v1061_v4 }
 0x2d6   :  { %788 = vmatprep.subr.mxu1 %v587_v47 }
 0x2d7   :  { %789 = vmatpush1.msra.mxu1 %v586_v58 }
 0x2d8   :  { %790 = vmatprep.subr.mxu1 %v571_v57 }
 0x2d9   :  { %791 = vmatpush1.msra.mxu1 %v570_v26 }
 0x2da   :  { %1033 = vmatmul.mubr.msk.f32.vlgmr.msra.gmra.mxu1 %vm685_vm10, %v684_v52 }
 0x2db   :  { %1001 = vmatprep.mubr.f32.mxu1 %v1061_v4 }
 0x394   :  { %v755_v11 = vpop.f32.mrf.mxu0 }
 0x395   :  { %v836_v28 = vmul.f32 %v755_v11, %v755_v11 }
 0x396   :  { %v757_v30 = vpop.f32.mrf.mxu0 }
 0x397   :  { %v837_v38 = vmul.f32 %v757_v30, %v757_v30  ;;  %v831_v33 = vadd.f32 %v757_v30, %v755_v11 }
 0x399   :  { %v840_v17 = vadd.f32 %v837_v38, %v836_v28 }
 0x39a   :  { %v826_v59 = vpop.f32.mrf.mxu1 }
 0x39b   :  { %v838_v18 = vmul.f32 %v826_v59, %v826_v59  ;;  %v832_v40 = vadd.f32 %v831_v33, %v826_v59 }
 0x39c   :  { %v828_v20 = vpop.f32.mrf.mxu1 }
 0x39d   :  { %v833_v34 = vadd.f32 %v832_v40, %v828_v20  ;;  %v839_v2 = vmul.f32 %v828_v20, %v828_v20  ;;  %v841_v54 = vadd.f32 %v840_v17, %v838_v18 }
 0x39f   :  { %834 = vadd.xlane.f32.xlu0 %v833_v34  ;;  %v842_v37 = vadd.f32 %v841_v54, %v839_v2 }
 0x3a1   :  { %843 = vadd.xlane.f32.xlu1 %v842_v37 }
 0x428   :  { %v835_v63 = vpop.xlane.xlu0 %834 }
 0x429   :  { %v845_v61 = vmul.f32 0.001953125, %v835_v63 }
 0x42a   :  { %v844_v49 = vpop.xlane.xlu1 %843 }
 0x42b   :  { %v847_v4 = vmul.f32 %v845_v61, %v845_v61  ;;  %v846_v50 = vmul.f32 0.001953125, %v844_v49  ;;  %v855_v16 = vsub.f32 0.0, %v845_v61 }
 0x42d   :  { %v848_v19 = vsub.f32 %v846_v50, %v847_v4 }
 0x42f   :  { %v849_v29 = vadd.f32 1e-05, %v848_v19 }
 0x431   :  { %1049 = vrsqrt.f32 %v849_v29 }
 0x43e   :  { %v1050_v15 = vpop.eup %1049 }
 0x43f   :  { %v852_v12 = vmul.f32 %v1050_v15, %v757_v30  ;;  %v856_v6 = vmul.f32 %v1050_v15, %v855_v16  ;;  %v854_v10 = vmul.f32 %v1050_v15, %v828_v20  ;;  %v851_v39 = vmul.f32 %v1050_v15, %v755_v11 }
 0x440   :  { %v853_v0 = vmul.f32 %v1050_v15, %v826_v59 }
 0x441   :  { %v858_v22 = vadd.f32 %v856_v6, %v852_v12  ;;  %v860_v31 = vadd.f32 %v856_v6, %v854_v10  ;;  %v857_v14 = vadd.f32 %v856_v6, %v851_v39 }
 0x442   :  { %v859_v51 = vadd.f32 %v856_v6, %v853_v0 }
 0x443   :  { %896 = vmatprep.subr.mxu0 %v858_v22  ;;  %967 = vmatprep.subr.mxu1 %v860_v31 }
 0x444   :  { %897 = vmatpush1.msra.mxu0 %v857_v14  ;;  %968 = vmatpush1.msra.mxu1 %v859_v51 }
 0x445   :  { %1034 = vmatmul.mubr.msk.f32.vlgmr.msra.gmra.mxu0 %vm862_vm11, %v861_v42  ;;  %1035 = vmatmul.mubr.msk.f32.vlgmr.msra.gmra.mxu1 %vm862_vm11, %v861_v42 }
 0x505   :  { %v932_v24 = vpop.f32.mrf.mxu0  ;;  %v1003_v9 = vpop.f32.mrf.mxu1 }
 0x507   :  { %v934_v62 = vpop.f32.mrf.mxu0  ;;  %v1005_v56 = vpop.f32.mrf.mxu1 }
 0x508   :  { %v1012_v41 = vcombine.low %v932_v24, %v934_v62  ;;  %v1013_v27 = vcombine.low %v1003_v9, %v1005_v56 }
 0x50a   :  { %v1016_v7 = vadd.f32 %v1051_v21, %v1012_v41  ;;  %v1017_v46 = vadd.f32 %v1052_v60, %v1013_v27 }
 0x50c   :  { %v1018_v48 = vmax.f32 %v1016_v7, 0.0  ;;  %v1019_v55 = vmax.f32 %v1017_v46, 0.0 }
 0x50e   :  { %1020 = vst [vmem:[%s1724_s5] sm:$0xff] %v1018_v48  ;;  %1021 = vst [vmem:[%s1724_s5 + $0x8] sm:$0xff] %v1019_v55 }

</bundles_post_ra>
